<compile_context>
chip_gen: v7x
topology: tpu7x:2x2x1
jax: 0.10.0
libtpu: 0.0.40
codegen_flags: <defaults>
</compile_context>

<pallas_src>
import functools

import jax
import jax.numpy as jnp
from jax.experimental import pallas as pl
from jax.experimental.pallas import tpu as pltpu


def _round_up(x: int, m: int) -> int:
    return ((x + m - 1) // m) * m


def _pick_rows(bn_pad: int, itemsize: int, target_bytes: int = 8 << 20) -> int:
    """Rows per block: multiple of 128 dividing bn_pad, block ~target_bytes."""
    row_bytes = bn_pad * itemsize
    cap = (target_bytes // row_bytes) // 128 * 128
    if bn_pad >= 256:
        # keep at least 2 row blocks so v7x can split the grid across its 2 TCs
        cap = min(cap, (bn_pad // 2) // 128 * 128)
    cap = max(cap, 128)
    cap = min(cap, bn_pad)
    t = cap
    while bn_pad % t != 0:  # 128 always divides bn_pad, so this terminates
        t -= 128
    return t


def _sum_offdiag_kernel(s0_ref, out_ref, *, inv_bn2):
    """Per row block: (sum(block) - trace(block-diag)) * inv_bn2 -> (8,128) partial."""
    i = pl.program_id(0)
    t_rows, bn_pad = s0_ref.shape

    s0 = s0_ref[...].astype(jnp.float32)  # (T, BN)

    # vreg-shaped partial sum: pure sublane-group / lane-group vadds, no
    # cross-lane XLU reduction on the big block.
    r = jnp.sum(s0.reshape(t_rows // 8, 8, bn_pad), axis=0)          # (8, BN)
    partial = jnp.sum(r.reshape(8, bn_pad // 128, 128), axis=1)      # (8, 128)

    # Diagonal of sim_0 inside this row block lives at local (r, i*T + r);
    # slice the (T, T) diagonal sub-block out of the VMEM-resident block.
    off = pl.multiple_of(i * t_rows, 128)
    d = s0_ref[:, pl.ds(off, t_rows)].astype(jnp.float32)            # (T, T)
    rr = jax.lax.broadcasted_iota(jnp.int32, d.shape, 0)
    cc = jax.lax.broadcasted_iota(jnp.int32, d.shape, 1)
    trace0 = jnp.sum(jnp.where(rr == cc, d, 0.0))

    out = partial * inv_bn2
    sub = jax.lax.broadcasted_iota(jnp.int32, out.shape, 0)
    lane = jax.lax.broadcasted_iota(jnp.int32, out.shape, 1)
    out = out - jnp.where((sub == 0) & (lane == 0), trace0 * inv_bn2, 0.0)

    out_ref[...] = out.reshape(out_ref.shape)  # unmasked (8,128) store


@jax.jit
def n_pair_loss(sim_0: jax.Array, sim_1: jax.Array) -> jax.Array:
    """Pallas implementation of N_pair_loss.forward. Returns a scalar (f32)."""
    bn = sim_0.shape[0]
    assert sim_0.shape == (bn, bn) and sim_1.shape == (bn, bn)

    # loss1 = trace(sim_1)/bn: only bn elements -> computed in the wrapper so the
    # streaming kernel never touches sim_1 (saves HBM traffic + a VMEM buffer).
    loss1 = jnp.sum(jnp.diagonal(sim_1).astype(jnp.float32)) / bn

    itemsize = jnp.dtype(sim_0.dtype).itemsize
    bn_pad = _round_up(bn, 128)
    if bn_pad != bn:
        # zero padding contributes nothing to either the off-diagonal sum or
        # the trace; the 1/bn^2 factor below uses the true bn.
        sim_0 = jnp.pad(sim_0, ((0, bn_pad - bn), (0, bn_pad - bn)))

    t_rows = _pick_rows(bn_pad, itemsize)
    nb = bn_pad // t_rows
    block_bytes = t_rows * bn_pad * itemsize

    kernel = functools.partial(_sum_offdiag_kernel, inv_bn2=1.0 / float(bn * bn))

    partials = pl.pallas_call(
        kernel,
        out_shape=jax.ShapeDtypeStruct((nb, 8, 128), jnp.float32),
        grid=(nb,),
        in_specs=[pl.BlockSpec((t_rows, bn_pad), lambda i: (i, 0))],
        out_specs=pl.BlockSpec((1, 8, 128), lambda i: (i, 0, 0)),
        compiler_params=pltpu.CompilerParams(
            dimension_semantics=("parallel",),
            vmem_limit_bytes=max(32 << 20, 2 * block_bytes + (2 << 20)),
        ),
    )(sim_0)

    loss2 = jnp.sum(partials)  # tiny (nb, 8, 128) array, already scaled by 1/bn^2
    return loss1 + loss2


def _reference(sim_0, sim_1):
    loss1 = jnp.mean(jnp.diag(sim_1).astype(jnp.float32))
    s0 = sim_0.astype(jnp.float32)
    s0 = s0 - jnp.diag(jnp.diag(s0))
    loss2 = jnp.mean(jnp.mean(s0, axis=1), axis=0)
    return loss1 + loss2


if __name__ == "__main__":
    key = jax.random.PRNGKey(0)
    ok = True
    # bn=8  : padding path, single block
    # bn=256: no padding, nb=2 (multi-block, diagonal offset per block)
    # bn=300: padding + nb=3
    for bn in (8, 256, 300):
        k0, k1 = jax.random.split(jax.random.fold_in(key, bn))
        sim_0 = jax.random.normal(k0, (bn, bn), dtype=jnp.float32)
        sim_1 = jax.random.normal(k1, (bn, bn), dtype=jnp.float32)

        loss = jax.block_until_ready(n_pair_loss(sim_0, sim_1))
        ref = jax.block_until_ready(_reference(sim_0, sim_1))

        if not jnp.allclose(loss, ref, atol=1e-4, rtol=1e-4):
            ok = False
            print("MISMATCH", bn, float(loss), float(ref))

    if ok:
        print("KERNEL_OK")
</pallas_src>

<mosaic_0001>
module attributes {stable_mosaic.version = 11 : i64} {
  func.func @_sum_offdiag_kernel(%arg0: i32, %arg1: memref<128x128xf32, #tpu.memory_space<vmem>>, %arg2: memref<1x8x128xf32, #tpu.memory_space<vmem>>) attributes {dimension_semantics = [#tpu.dimension_semantics<parallel>], iteration_bounds = array<i64: 1>, scalar_prefetch = 0 : i64, scratch_operands = 0 : i64, tpu.core_type = #tpu.core_type<tc>, window_params = [{transform_indices = @transform_0, window_bounds = array<i64: 128, 128>}, {transform_indices = @transform_1, window_bounds = array<i64: 1, 8, 128>}]} {
    %c0 = arith.constant 0 : index
    %c0_0 = arith.constant 0 : index
    %0 = vector.load %arg1[%c0, %c0_0] : memref<128x128xf32, #tpu.memory_space<vmem>>, vector<128x128xf32>
    %1 = vector.shape_cast %0 : vector<128x128xf32> to vector<16x8x128xf32>
    %cst = arith.constant dense<0.000000e+00> : vector<8x128xf32>
    %2 = vector.multi_reduction <add>, %1, %cst [0] : vector<16x8x128xf32> to vector<8x128xf32>
    %3 = vector.shape_cast %2 : vector<8x128xf32> to vector<8x1x128xf32>
    %cst_1 = arith.constant dense<0.000000e+00> : vector<8x128xf32>
    %4 = vector.multi_reduction <add>, %3, %cst_1 [1] : vector<8x1x128xf32> to vector<8x128xf32>
    %c128_i32 = arith.constant 128 : i32
    %5 = arith.muli %arg0, %c128_i32 : i32
    %6 = tpu.assume_multiple %5, 128 : i32
    %c0_2 = arith.constant 0 : index
    %7 = arith.index_cast %6 : i32 to index
    %8 = vector.load %arg1[%c0_2, %7] : memref<128x128xf32, #tpu.memory_space<vmem>>, vector<128x128xf32>
    %9 = tpu.iota {dimensions = array<i32: 0>} : vector<128x128xi32>
    %10 = tpu.iota {dimensions = array<i32: 1>} : vector<128x128xi32>
    %11 = arith.cmpi eq, %9, %10 : vector<128x128xi32>
    %cst_3 = arith.constant 0.000000e+00 : f32
    %12 = vector.broadcast %cst_3 : f32 to vector<128x128xf32>
    %13 = arith.select %11, %8, %12 : vector<128x128xi1>, vector<128x128xf32>
    %14 = vector.shape_cast %13 : vector<128x128xf32> to vector<1x128x128xf32>
    %cst_4 = arith.constant dense<0.000000e+00> : vector<1xf32>
    %15 = vector.multi_reduction <add>, %14, %cst_4 [1, 2] : vector<1x128x128xf32> to vector<1xf32>
    %16 = vector.shape_cast %15 : vector<1xf32> to vector<1x1x1xf32>
    %17 = vector.extract %16[0, 0, 0] : f32 from vector<1x1x1xf32>
    %cst_5 = arith.constant 1.562500e-02 : f32
    %18 = vector.broadcast %cst_5 : f32 to vector<8x128xf32>
    %19 = arith.mulf %4, %18 : vector<8x128xf32>
    %20 = tpu.iota {dimensions = array<i32: 0>} : vector<8x128xi32>
    %21 = tpu.iota {dimensions = array<i32: 1>} : vector<8x128xi32>
    %c0_i32 = arith.constant 0 : i32
    %22 = vector.broadcast %c0_i32 : i32 to vector<8x128xi32>
    %23 = arith.cmpi eq, %20, %22 : vector<8x128xi32>
    %c0_i32_6 = arith.constant 0 : i32
    %24 = vector.broadcast %c0_i32_6 : i32 to vector<8x128xi32>
    %25 = arith.cmpi eq, %21, %24 : vector<8x128xi32>
    %26 = arith.andi %23, %25 : vector<8x128xi1>
    %cst_7 = arith.constant 1.562500e-02 : f32
    %27 = arith.mulf %17, %cst_7 : f32
    %cst_8 = arith.constant 0.000000e+00 : f32
    %28 = vector.broadcast %27 : f32 to vector<8x128xf32>
    %29 = vector.broadcast %cst_8 : f32 to vector<8x128xf32>
    %30 = arith.select %26, %28, %29 : vector<8x128xi1>, vector<8x128xf32>
    %31 = arith.subf %19, %30 : vector<8x128xf32>
    %32 = vector.shape_cast %31 : vector<8x128xf32> to vector<1x8x128xf32>
    %c0_9 = arith.constant 0 : index
    %c0_10 = arith.constant 0 : index
    %c0_11 = arith.constant 0 : index
    %33 = vector.load %arg2[%c0_9, %c0_10, %c0_11] : memref<1x8x128xf32, #tpu.memory_space<vmem>>, vector<1x8x128xf32>
    tpu.vector_store %arg2[%c0_9, %c0_10, %c0_11], %32 {strides = array<i32>} : memref<1x8x128xf32, #tpu.memory_space<vmem>>, vector<1x8x128xf32>,
    return
  }
  func.func @transform_0(%arg0: i32) -> (i32, i32) {
    %c0_i32 = arith.constant 0 : i32
    %c0_i32_0 = arith.constant 0 : i32
    return %arg0, %c0_i32 : i32, i32
  }
  func.func @transform_1(%arg0: i32) -> (i32, i32, i32) {
    %c0_i32 = arith.constant 0 : i32
    %c0_i32_0 = arith.constant 0 : i32
    %c0_i32_1 = arith.constant 0 : i32
    return %arg0, %c0_i32, %c0_i32_0 : i32, i32, i32
  }
}

</mosaic_0001>

<bundles_post_ra>
// kernel: n_pair_loss.1
= control target key start
LH: loop header
LB: loop body
LE: loop exit
PB: predicated region body
PF: predicated region fallthrough
CT: control target
= control target key end

     0   :  { %v60_v0 = vlaneseq  ;;  %s278_s0 = inlined_call_operand.vmem [shape: f32[128,128], index: 0, kind: input, shape index: {}]   ;;  %s279_s1 = inlined_call_operand.vmem [shape: f32[1,8,128], index: 1, kind: output, shape index: {}]  }
   0x1   :  { %v170_v5 = vld [vmem:[%s278_s0] sm:$0xff]  ;;  %v175_v6 = vld [vmem:[%s278_s0 + $0x8] sm:$0xff]  ;;  %v184_v8 = vld [vmem:[%s278_s0 + $0x10] sm:$0xff] }
   0x2   :  { %v161_v1 = vshrl.u32 %v60_v0, 7  ;;  %v164_v3 = vand.u32 127, %v60_v0  ;;  %v193_v12 = vld [vmem:[%s278_s0 + $0x18] sm:$0xff]  ;;  %v201_v15 = vld [vmem:[%s278_s0 + $0x20] sm:$0xff]  ;;  %v209_v19 = vld [vmem:[%s278_s0 + $0x28] sm:$0xff] }
   0x3   :  { %v217_v23 = vld [vmem:[%s278_s0 + $0x30] sm:$0xff]  ;;  %v51_v27 = vld [vmem:[%s278_s0 + $0x38] sm:$0xff]  ;;  %v52_v31 = vld [vmem:[%s278_s0 + $0x40] sm:$0xff] }
   0x4   :  { %v62_v2 = vadd.s32 8, %v161_v1  ;;  %v63_v4 = vadd.s32 16, %v161_v1  ;;  %v64_v7 = vadd.s32 24, %v161_v1  ;;  %vm79_vm0 = vcmp.eq.s32.totalorder %v161_v1, %v164_v3  ;;  %v53_v35 = vld [vmem:[%s278_s0 + $0x48] sm:$0xff]  ;;  %v54_v39 = vld [vmem:[%s278_s0 + $0x50] sm:$0xff]  ;;  %v55_v43 = vld [vmem:[%s278_s0 + $0x58] sm:$0xff] }
   0x5   :  { %v65_v9 = vadd.s32 32, %v161_v1  ;;  %v95_v10 = vsel %vm79_vm0, %v170_v5, 0.0  ;;  %v66_v13 = vadd.s32 40, %v161_v1  ;;  %v67_v16 = vadd.s32 48, %v161_v1  ;;  %v56_v47 = vld [vmem:[%s278_s0 + $0x60] sm:$0xff]  ;;  %v57_v51 = vld [vmem:[%s278_s0 + $0x68] sm:$0xff] }
   0x6   :  { %vm80_vm1 = vcmp.eq.s32.totalorder %v62_v2, %v164_v3  ;;  %vm81_vm2 = vcmp.eq.s32.totalorder %v63_v4, %v164_v3  ;;  %vm82_vm3 = vcmp.eq.s32.totalorder %v64_v7, %v164_v3  ;;  %v68_v20 = vadd.s32 56, %v161_v1  ;;  %v58_v55 = vld [vmem:[%s278_s0 + $0x70] sm:$0xff]  ;;  %v59_v58 = vld [vmem:[%s278_s0 + $0x78] sm:$0xff] }
   0x7   :  { %v96_v11 = vsel %vm80_vm1, %v175_v6, 0.0  ;;  %v97_v14 = vsel %vm81_vm2, %v184_v8, 0.0  ;;  %vm83_vm4 = vcmp.eq.s32.totalorder %v65_v9, %v164_v3  ;;  %v98_v18 = vsel %vm82_vm3, %v193_v12, 0.0 }
   0x8   :  { %v111_v17 = vadd.f32 %v96_v11, %v95_v10  ;;  %vm84_vm5 = vcmp.eq.s32.totalorder %v66_v13, %v164_v3  ;;  %v99_v22 = vsel %vm83_vm4, %v201_v15, 0.0  ;;  %v69_v24 = vadd.s32 64, %v161_v1 }
   0x9   :  { %vm85_vm6 = vcmp.eq.s32.totalorder %v67_v16, %v164_v3  ;;  %v100_v26 = vsel %vm84_vm5, %v209_v19, 0.0  ;;  %v70_v28 = vadd.s32 72, %v161_v1  ;;  %vm86_vm7 = vcmp.eq.s32.totalorder %v68_v20, %v164_v3 }
   0xa   :  { %v112_v21 = vadd.f32 %v111_v17, %v97_v14  ;;  %v101_v30 = vsel %vm85_vm6, %v217_v23, 0.0  ;;  %v71_v32 = vadd.s32 80, %v161_v1  ;;  %vm87_vm8 = vcmp.eq.s32.totalorder %v69_v24, %v164_v3 }
   0xb   :  { %v102_v34 = vsel %vm86_vm7, %v51_v27, 0.0  ;;  %v72_v36 = vadd.s32 88, %v161_v1  ;;  %vm88_vm9 = vcmp.eq.s32.totalorder %v70_v28, %v164_v3  ;;  %v103_v38 = vsel %vm87_vm8, %v52_v31, 0.0 }
   0xc   :  { %v113_v25 = vadd.f32 %v112_v21, %v98_v18  ;;  %v73_v40 = vadd.s32 96, %v161_v1  ;;  %vm89_vm10 = vcmp.eq.s32.totalorder %v71_v32, %v164_v3  ;;  %v104_v42 = vsel %vm88_vm9, %v53_v35, 0.0 }
   0xd   :  { %v74_v44 = vadd.s32 104, %v161_v1  ;;  %vm90_vm11 = vcmp.eq.s32.totalorder %v72_v36, %v164_v3  ;;  %v105_v46 = vsel %vm89_vm10, %v54_v39, 0.0  ;;  %v75_v48 = vadd.s32 112, %v161_v1 }
   0xe   :  { %v114_v29 = vadd.f32 %v113_v25, %v99_v22  ;;  %vm91_vm12 = vcmp.eq.s32.totalorder %v73_v40, %v164_v3  ;;  %v106_v50 = vsel %vm90_vm11, %v55_v43, 0.0  ;;  %v76_v52 = vadd.s32 120, %v161_v1 }
   0xf   :  { %vm92_vm13 = vcmp.eq.s32.totalorder %v74_v44, %v164_v3  ;;  %v107_v54 = vsel %vm91_vm12, %v56_v47, 0.0  ;;  %vm93_vm14 = vcmp.eq.s32.totalorder %v75_v48, %v164_v3  ;;  %v24_v2 = vadd.f32 %v175_v6, %v170_v5 }
  0x10   :  { %v115_v33 = vadd.f32 %v114_v29, %v100_v26  ;;  %v108_v57 = vsel %vm92_vm13, %v57_v51, 0.0  ;;  %vm94_vm15 = vcmp.eq.s32.totalorder %v76_v52, %v164_v3  ;;  %v109_v60 = vsel %vm93_vm14, %v58_v55, 0.0 }
  0x11   :  { %v110_v62 = vsel %vm94_vm15, %v59_v58, 0.0  ;;  %v25_v4 = vadd.f32 %v184_v8, %v24_v2  ;;  %vm136_vm0 = vcmp.eq.s32.totalorder %v161_v1, 0  ;;  %vm137_vm1 = vcmp.eq.s32.totalorder %v164_v3, 0 }
  0x12   :  { %v116_v37 = vadd.f32 %v115_v33, %v101_v30  ;;  %vm138_vm2 = vmand %vm136_vm0, %vm137_vm1 }
  0x13   :  { %v26_v7 = vadd.f32 %v193_v12, %v25_v4 }
  0x14   :  { %v117_v41 = vadd.f32 %v116_v37, %v102_v34 }
  0x15   :  { %v27_v18 = vadd.f32 %v201_v15, %v26_v7 }
  0x16   :  { %v118_v45 = vadd.f32 %v117_v41, %v103_v38 }
  0x17   :  { %v28_v20 = vadd.f32 %v209_v19, %v27_v18 }
  0x18   :  { %v119_v49 = vadd.f32 %v118_v45, %v104_v42 }
  0x19   :  { %v29_v21 = vadd.f32 %v217_v23, %v28_v20 }
  0x1a   :  { %v120_v53 = vadd.f32 %v119_v49, %v105_v46 }
  0x1b   :  { %v30_v22 = vadd.f32 %v51_v27, %v29_v21 }
  0x1c   :  { %v121_v56 = vadd.f32 %v120_v53, %v106_v50 }
  0x1d   :  { %v31_v5 = vadd.f32 %v52_v31, %v30_v22 }
  0x1e   :  { %v122_v59 = vadd.f32 %v121_v56, %v107_v54 }
  0x1f   :  { %v32_v6 = vadd.f32 %v53_v35, %v31_v5 }
  0x20   :  { %v123_v61 = vadd.f32 %v122_v59, %v108_v57 }
  0x21   :  { %v33_v8 = vadd.f32 %v54_v39, %v32_v6 }
  0x22   :  { %v124_v63 = vadd.f32 %v123_v61, %v109_v60 }
  0x23   :  { %v34_v24 = vadd.f32 %v55_v43, %v33_v8 }
  0x24   :  { %v125_v0 = vadd.f32 %v124_v63, %v110_v62 }
  0x25   :  { %v35_v12 = vadd.f32 %v56_v47, %v34_v24 }
  0x26   :  { %126 = vadd.xlane.f32.xlu0 %v125_v0 }
  0x27   :  { %v36_v25 = vadd.f32 %v57_v51, %v35_v12 }
  0x29   :  { %v37_v26 = vadd.f32 %v58_v55, %v36_v25 }
  0x2b   :  { %v38_v28 = vadd.f32 %v59_v58, %v37_v26 }
  0x2d   :  { %v135_v29 = vmul.f32 0.015625, %v38_v28 }
  0xb3   :  { %v127_v9 = vpop.xlane.xlu0 %126 }
  0xb4   :  { %v128_v10 = vrot.slane %v127_v9, 4 }
  0xb6   :  { %v129_v11 = vadd.f32 %v128_v10, %v127_v9 }
  0xb8   :  { %v130_v13 = vrot.slane %v129_v11, 2 }
  0xba   :  { %v131_v14 = vadd.f32 %v130_v13, %v129_v11 }
  0xbc   :  { %v132_v16 = vrot.slane %v131_v14, 1 }
  0xbe   :  { %v133_v17 = vadd.f32 %v132_v16, %v131_v14 }
  0xc0   :  { %149 = vpush %v133_v17 }
  0xf1   :  { %s150_s0 = spop %149 }
  0xf2   :  { %s139_s9 = smul.f32 0.015625, %s150_s0 }
  0xf4   :  { %v140_v15 = vstv %s139_s9 }
  0xf5   :  { %v141_v19 = vsel %vm138_vm2, %v140_v15, 0.0 }
  0xf6   :  { %v142_v23 = vsub.f32 %v135_v29, %v141_v19 }
  0xf8   :  { %143 = vst [vmem:[%s279_s1] sm:$0xff] %v142_v23 }

</bundles_post_ra>
